<compile_context>
chip_gen: v7x
topology: tpu7x:2x2x1
jax: 0.10.0
libtpu: 0.0.40
codegen_flags: <defaults>
</compile_context>

<pallas_src>
import functools

import jax
import jax.numpy as jnp
from jax import lax
from jax.experimental import pallas as pl
from jax.experimental.pallas import tpu as pltpu

ALPHAS = (0.2, 0.4, 0.6, 0.8, 1.0)
EPS = 1e-5
MOMENTUM = 0.1
LANE = 128
MAX_TILE_C = 512  # conservative for v7x's smaller VMEM; plenty for v5e/v6e


def _split_nums(n):
    outs = []
    for a in ALPHAS:
        s = int(n * (1.0 - a))
        if s > n:
            s = n
        if s <= 1:
            s = 2
        outs.append(s)
    return tuple(outs)


def _newbn_kernel(x_ref, sw_ref, gamma_ref, beta_ref,
                  out_ref, sd_ref, *, distinct_ks, eps):
    x = x_ref[...].astype(jnp.float32)            # (N, TILE_C)
    n, tc = x.shape
    mean = jnp.sum(x, axis=0, keepdims=True) * (1.0 / n)   # (1, TILE_C)

    # ---- Rank-based top-k selection -------------------------------------
    # rank[i] = #(j != i) with x[j] > x[i], ties broken by original index,
    # so rank is a per-column permutation of 0..N-1 (rank 0 == largest).
    # Tie-break note: roll(iota, s)[i] < i  <=>  i >= s, so the rolled-iota
    # compare collapses to a single compare against the (hoisted) row iota.
    row_iota = lax.broadcasted_iota(jnp.int32, x.shape, 0)   # hoisted once
    rank = jnp.zeros(x.shape, jnp.int32)
    for s in range(1, n):
        x_s = pltpu.roll(x, shift=s, axis=0)                 # XLU
        gt = (x_s > x) | ((x_s == x) & (row_iota >= s))      # VPU
        rank = rank + gt.astype(jnp.int32)

    # ---- Per-element coefficients, folded softmax weights -----------------
    # stat  = sum_k w_k * (k-th largest)         -> coef_stat picks rank==k-1
    # dev   = sum_k w_k * (sum(top-k)/(k-1))     -> coef_dev adds w_k/(k-1)
    #         - (sum_k w_k) * mean                  for every rank < k
    # Only 2 sublane reductions total, independent of the number of ks.
    coef_stat = jnp.zeros_like(x)
    coef_dev = jnp.zeros_like(x)
    w_total = jnp.float32(0.0)
    for idx, k in enumerate(distinct_ks):
        w = sw_ref[idx]                                      # SMEM scalar
        w_total = w_total + w
        coef_stat = coef_stat + jnp.where(rank == (k - 1), w, 0.0)
        coef_dev = coef_dev + jnp.where(rank < k, w * (1.0 / (k - 1)), 0.0)
    stat_comb = jnp.sum(x * coef_stat, axis=0, keepdims=True)        # (1, C)
    dev_comb = (jnp.sum(x * coef_dev, axis=0, keepdims=True)
                - w_total * mean)                                    # (1, C)

    # ---- Fused epilogue: reciprocal on the (1,C) row only -----------------
    inv = pl.reciprocal(dev_comb + eps, approx=False)     # exact 1/(dev+eps)
    scale = gamma_ref[...] * inv                          # (1, TILE_C)
    shift = beta_ref[...] - stat_comb * scale             # (1, TILE_C)
    out_ref[...] = (x * scale + shift).astype(out_ref.dtype)

    # ---- Pack stat/dev into one sublane/lane-dense (8, TILE_C) slab -------
    sub = lax.broadcasted_iota(jnp.int32, (8, tc), 0)
    sd_ref[...] = jnp.where(sub == 0, stat_comb,
                            jnp.where(sub == 1, dev_comb, 0.0))


def new_batchnorm1d_forward(x, weight, bias, switch, running_mean, running_var,
                            momentum=MOMENTUM, eps=EPS):
    """Training-mode forward. Returns (bn_output, new_running_mean, new_running_var)."""
    n, c = x.shape
    split_nums = _split_nums(n)
    distinct_ks = tuple(sorted(set(split_nums)))

    # Glue: softmax(switch) -> fold weights of duplicate k values.
    sw = jax.nn.softmax(switch).astype(jnp.float32)
    w_folded = jnp.stack([
        sum(sw[i] for i in range(len(split_nums)) if split_nums[i] == k)
        for k in distinct_ks])                           # (num_distinct_k,)

    # Lane-dense feature tiling: pad C to a multiple of 128 and tile it.
    if c <= MAX_TILE_C:
        tile_c = ((c + LANE - 1) // LANE) * LANE
    else:
        tile_c = MAX_TILE_C
    c_pad = ((c + tile_c - 1) // tile_c) * tile_c
    num_tiles = c_pad // tile_c

    x_p = jnp.pad(x, ((0, 0), (0, c_pad - c)))
    gamma_p = jnp.pad(weight.reshape(1, c).astype(jnp.float32),
                      ((0, 0), (0, c_pad - c)))
    beta_p = jnp.pad(bias.reshape(1, c).astype(jnp.float32),
                     ((0, 0), (0, c_pad - c)))

    kernel = functools.partial(_newbn_kernel, distinct_ks=distinct_ks, eps=eps)
    out_p, sd = pl.pallas_call(
        kernel,
        grid=(num_tiles,),
        out_shape=(jax.ShapeDtypeStruct((n, c_pad), x.dtype),
                   jax.ShapeDtypeStruct((8, c_pad), jnp.float32)),
        in_specs=[
            pl.BlockSpec((n, tile_c), lambda j: (0, j)),            # x
            pl.BlockSpec(memory_space=pltpu.MemorySpace.SMEM),      # folded sw
            pl.BlockSpec((1, tile_c), lambda j: (0, j)),            # weight
            pl.BlockSpec((1, tile_c), lambda j: (0, j)),            # bias
        ],
        out_specs=(
            pl.BlockSpec((n, tile_c), lambda j: (0, j)),            # out
            pl.BlockSpec((8, tile_c), lambda j: (0, j)),            # stat/dev
        ),
        compiler_params=pltpu.CompilerParams(
            dimension_semantics=("parallel",)),
    )(x_p, w_folded, gamma_p, beta_p)

    out = out_p[:, :c]
    stat = sd[0, :c]
    dev = sd[1, :c]
    new_running_mean = momentum * stat + (1.0 - momentum) * running_mean
    new_running_var = momentum * dev + (1.0 - momentum) * running_var
    return out, new_running_mean, new_running_var


def _ref_forward(x, weight, bias, switch, eps=EPS):
    """Pure-JAX reference mirroring the (intended) PyTorch semantics."""
    n = x.shape[0]
    x_sort = -jnp.sort(-x, axis=0)  # descending sort along batch
    mean = jnp.mean(x, axis=0)
    stats, devs = [], []
    for k in _split_nums(n):
        topk = x_sort[:k, :]
        stats.append(jnp.min(topk, axis=0))
        devs.append(jnp.sum(topk, axis=0) / (k - 1) - mean)
    stats = jnp.stack(stats)
    devs = jnp.stack(devs)
    w = jax.nn.softmax(switch)[:, None]
    stat = jnp.sum(w * stats, axis=0)
    dev = jnp.sum(w * devs, axis=0)
    return weight * (x - stat) / (dev + eps) + bias


if __name__ == "__main__":
    key = jax.random.PRNGKey(0)
    kx, kw, ks = jax.random.split(key, 3)

    N, C = 8, 32  # (batch, num_features)
    x = jax.random.normal(kx, (N, C), dtype=jnp.float32)

    # Deterministic parameter init matching reset_parameters():
    weight = jax.random.uniform(kw, (C,), dtype=jnp.float32)  # weight.uniform_()
    bias = jnp.zeros((C,), dtype=jnp.float32)                 # bias.zero_()
    switch = jax.random.normal(ks, (5,), dtype=jnp.float32)   # torch.randn(5)
    running_mean = jnp.zeros((C,), dtype=jnp.float32)
    running_var = jnp.ones((C,), dtype=jnp.float32)

    out, new_rm, new_rv = new_batchnorm1d_forward(
        x, weight, bias, switch, running_mean, running_var)
    jax.block_until_ready((out, new_rm, new_rv))

    ref = _ref_forward(x, weight, bias, switch)
    assert out.shape == (N, C) and out.dtype == x.dtype
    assert jnp.allclose(out, ref, rtol=1e-4, atol=1e-4), "kernel != reference"

    # Running-stat glue sanity check against the reference stats.
    x_sort = -jnp.sort(-x, axis=0)
    mean = jnp.mean(x, axis=0)
    stats_l, devs_l = [], []
    for k in _split_nums(N):
        topk = x_sort[:k, :]
        stats_l.append(jnp.min(topk, axis=0))
        devs_l.append(jnp.sum(topk, axis=0) / (k - 1) - mean)
    w = jax.nn.softmax(switch)[:, None]
    stat_ref = jnp.sum(w * jnp.stack(stats_l), axis=0)
    dev_ref = jnp.sum(w * jnp.stack(devs_l), axis=0)
    assert jnp.allclose(new_rm, MOMENTUM * stat_ref + (1 - MOMENTUM) * running_mean,
                        rtol=1e-4, atol=1e-4)
    assert jnp.allclose(new_rv, MOMENTUM * dev_ref + (1 - MOMENTUM) * running_var,
                        rtol=1e-4, atol=1e-4)

    print("KERNEL_OK")
</pallas_src>

<mosaic_0001>
module attributes {stable_mosaic.version = 11 : i64} {
  func.func @_newbn_kernel(%arg0: i32, %arg1: memref<8x128xf32, #tpu.memory_space<vmem>>, %arg2: memref<4xf32, #tpu.memory_space<smem>>, %arg3: memref<1x128xf32, #tpu.memory_space<vmem>>, %arg4: memref<1x128xf32, #tpu.memory_space<vmem>>, %arg5: memref<8x128xf32, #tpu.memory_space<vmem>>, %arg6: memref<8x128xf32, #tpu.memory_space<vmem>>) attributes {dimension_semantics = [#tpu.dimension_semantics<parallel>], iteration_bounds = array<i64: 1>, scalar_prefetch = 0 : i64, scratch_operands = 0 : i64, tpu.core_type = #tpu.core_type<tc>, window_params = [{transform_indices = @transform_0, window_bounds = array<i64: 8, 128>}, {transform_indices = @transform_1, window_bounds = array<i64: 4>}, {transform_indices = @transform_2, window_bounds = array<i64: 1, 128>}, {transform_indices = @transform_3, window_bounds = array<i64: 1, 128>}, {transform_indices = @transform_4, window_bounds = array<i64: 8, 128>}, {transform_indices = @transform_5, window_bounds = array<i64: 8, 128>}]} {
    %c0 = arith.constant 0 : index
    %c0_0 = arith.constant 0 : index
    %0 = vector.load %arg1[%c0, %c0_0] : memref<8x128xf32, #tpu.memory_space<vmem>>, vector<8x128xf32>
    %cst = arith.constant dense<0.000000e+00> : vector<128xf32>
    %1 = vector.multi_reduction <add>, %0, %cst [0] : vector<8x128xf32> to vector<128xf32>
    %2 = vector.shape_cast %1 : vector<128xf32> to vector<1x128xf32>
    %cst_1 = arith.constant 1.250000e-01 : f32
    %3 = vector.broadcast %cst_1 : f32 to vector<1x128xf32>
    %4 = arith.mulf %2, %3 : vector<1x128xf32>
    %5 = tpu.iota {dimensions = array<i32: 0>} : vector<8x128xi32>
    %c0_i32 = arith.constant 0 : i32
    %6 = vector.broadcast %c0_i32 : i32 to vector<8x128xi32>
    %c1_i32 = arith.constant 1 : i32
    %7 = tpu.dynamic_rotate %0 by %c1_i32 dim 0 : vector<8x128xf32>, i32 -> vector<8x128xf32>
    %8 = arith.cmpf ogt, %7, %0 : vector<8x128xf32>
    %9 = arith.cmpf oeq, %7, %0 : vector<8x128xf32>
    %c1_i32_2 = arith.constant 1 : i32
    %10 = vector.broadcast %c1_i32_2 : i32 to vector<8x128xi32>
    %11 = arith.cmpi sge, %5, %10 : vector<8x128xi32>
    %12 = arith.andi %9, %11 : vector<8x128xi1>
    %13 = arith.ori %8, %12 : vector<8x128xi1>
    %14 = arith.extui %13 : vector<8x128xi1> to vector<8x128xi32>
    %15 = arith.addi %6, %14 : vector<8x128xi32>
    %c2_i32 = arith.constant 2 : i32
    %16 = tpu.dynamic_rotate %0 by %c2_i32 dim 0 : vector<8x128xf32>, i32 -> vector<8x128xf32>
    %17 = arith.cmpf ogt, %16, %0 : vector<8x128xf32>
    %18 = arith.cmpf oeq, %16, %0 : vector<8x128xf32>
    %c2_i32_3 = arith.constant 2 : i32
    %19 = vector.broadcast %c2_i32_3 : i32 to vector<8x128xi32>
    %20 = arith.cmpi sge, %5, %19 : vector<8x128xi32>
    %21 = arith.andi %18, %20 : vector<8x128xi1>
    %22 = arith.ori %17, %21 : vector<8x128xi1>
    %23 = arith.extui %22 : vector<8x128xi1> to vector<8x128xi32>
    %24 = arith.addi %15, %23 : vector<8x128xi32>
    %c3_i32 = arith.constant 3 : i32
    %25 = tpu.dynamic_rotate %0 by %c3_i32 dim 0 : vector<8x128xf32>, i32 -> vector<8x128xf32>
    %26 = arith.cmpf ogt, %25, %0 : vector<8x128xf32>
    %27 = arith.cmpf oeq, %25, %0 : vector<8x128xf32>
    %c3_i32_4 = arith.constant 3 : i32
    %28 = vector.broadcast %c3_i32_4 : i32 to vector<8x128xi32>
    %29 = arith.cmpi sge, %5, %28 : vector<8x128xi32>
    %30 = arith.andi %27, %29 : vector<8x128xi1>
    %31 = arith.ori %26, %30 : vector<8x128xi1>
    %32 = arith.extui %31 : vector<8x128xi1> to vector<8x128xi32>
    %33 = arith.addi %24, %32 : vector<8x128xi32>
    %c4_i32 = arith.constant 4 : i32
    %34 = tpu.dynamic_rotate %0 by %c4_i32 dim 0 : vector<8x128xf32>, i32 -> vector<8x128xf32>
    %35 = arith.cmpf ogt, %34, %0 : vector<8x128xf32>
    %36 = arith.cmpf oeq, %34, %0 : vector<8x128xf32>
    %c4_i32_5 = arith.constant 4 : i32
    %37 = vector.broadcast %c4_i32_5 : i32 to vector<8x128xi32>
    %38 = arith.cmpi sge, %5, %37 : vector<8x128xi32>
    %39 = arith.andi %36, %38 : vector<8x128xi1>
    %40 = arith.ori %35, %39 : vector<8x128xi1>
    %41 = arith.extui %40 : vector<8x128xi1> to vector<8x128xi32>
    %42 = arith.addi %33, %41 : vector<8x128xi32>
    %c5_i32 = arith.constant 5 : i32
    %43 = tpu.dynamic_rotate %0 by %c5_i32 dim 0 : vector<8x128xf32>, i32 -> vector<8x128xf32>
    %44 = arith.cmpf ogt, %43, %0 : vector<8x128xf32>
    %45 = arith.cmpf oeq, %43, %0 : vector<8x128xf32>
    %c5_i32_6 = arith.constant 5 : i32
    %46 = vector.broadcast %c5_i32_6 : i32 to vector<8x128xi32>
    %47 = arith.cmpi sge, %5, %46 : vector<8x128xi32>
    %48 = arith.andi %45, %47 : vector<8x128xi1>
    %49 = arith.ori %44, %48 : vector<8x128xi1>
    %50 = arith.extui %49 : vector<8x128xi1> to vector<8x128xi32>
    %51 = arith.addi %42, %50 : vector<8x128xi32>
    %c6_i32 = arith.constant 6 : i32
    %52 = tpu.dynamic_rotate %0 by %c6_i32 dim 0 : vector<8x128xf32>, i32 -> vector<8x128xf32>
    %53 = arith.cmpf ogt, %52, %0 : vector<8x128xf32>
    %54 = arith.cmpf oeq, %52, %0 : vector<8x128xf32>
    %c6_i32_7 = arith.constant 6 : i32
    %55 = vector.broadcast %c6_i32_7 : i32 to vector<8x128xi32>
    %56 = arith.cmpi sge, %5, %55 : vector<8x128xi32>
    %57 = arith.andi %54, %56 : vector<8x128xi1>
    %58 = arith.ori %53, %57 : vector<8x128xi1>
    %59 = arith.extui %58 : vector<8x128xi1> to vector<8x128xi32>
    %60 = arith.addi %51, %59 : vector<8x128xi32>
    %c7_i32 = arith.constant 7 : i32
    %61 = tpu.dynamic_rotate %0 by %c7_i32 dim 0 : vector<8x128xf32>, i32 -> vector<8x128xf32>
    %62 = arith.cmpf ogt, %61, %0 : vector<8x128xf32>
    %63 = arith.cmpf oeq, %61, %0 : vector<8x128xf32>
    %c7_i32_8 = arith.constant 7 : i32
    %64 = vector.broadcast %c7_i32_8 : i32 to vector<8x128xi32>
    %65 = arith.cmpi sge, %5, %64 : vector<8x128xi32>
    %66 = arith.andi %63, %65 : vector<8x128xi1>
    %67 = arith.ori %62, %66 : vector<8x128xi1>
    %68 = arith.extui %67 : vector<8x128xi1> to vector<8x128xi32>
    %69 = arith.addi %60, %68 : vector<8x128xi32>
    %cst_9 = arith.constant 0.000000e+00 : f32
    %70 = vector.broadcast %cst_9 : f32 to vector<8x128xf32>
    %cst_10 = arith.constant 0.000000e+00 : f32
    %71 = vector.broadcast %cst_10 : f32 to vector<8x128xf32>
    %c0_11 = arith.constant 0 : index
    %72 = memref.load %arg2[%c0_11] : memref<4xf32, #tpu.memory_space<smem>>
    %cst_12 = arith.constant 0.000000e+00 : f32
    %73 = arith.addf %cst_12, %72 : f32
    %c1_i32_13 = arith.constant 1 : i32
    %74 = vector.broadcast %c1_i32_13 : i32 to vector<8x128xi32>
    %75 = arith.cmpi eq, %69, %74 : vector<8x128xi32>
    %cst_14 = arith.constant 0.000000e+00 : f32
    %76 = vector.broadcast %72 : f32 to vector<8x128xf32>
    %77 = vector.broadcast %cst_14 : f32 to vector<8x128xf32>
    %78 = arith.select %75, %76, %77 : vector<8x128xi1>, vector<8x128xf32>
    %79 = arith.addf %70, %78 : vector<8x128xf32>
    %c2_i32_15 = arith.constant 2 : i32
    %80 = vector.broadcast %c2_i32_15 : i32 to vector<8x128xi32>
    %81 = arith.cmpi slt, %69, %80 : vector<8x128xi32>
    %cst_16 = arith.constant 1.000000e+00 : f32
    %82 = arith.mulf %72, %cst_16 : f32
    %cst_17 = arith.constant 0.000000e+00 : f32
    %83 = vector.broadcast %82 : f32 to vector<8x128xf32>
    %84 = vector.broadcast %cst_17 : f32 to vector<8x128xf32>
    %85 = arith.select %81, %83, %84 : vector<8x128xi1>, vector<8x128xf32>
    %86 = arith.addf %71, %85 : vector<8x128xf32>
    %c1 = arith.constant 1 : index
    %87 = memref.load %arg2[%c1] : memref<4xf32, #tpu.memory_space<smem>>
    %88 = arith.addf %73, %87 : f32
    %c2_i32_18 = arith.constant 2 : i32
    %89 = vector.broadcast %c2_i32_18 : i32 to vector<8x128xi32>
    %90 = arith.cmpi eq, %69, %89 : vector<8x128xi32>
    %cst_19 = arith.constant 0.000000e+00 : f32
    %91 = vector.broadcast %87 : f32 to vector<8x128xf32>
    %92 = vector.broadcast %cst_19 : f32 to vector<8x128xf32>
    %93 = arith.select %90, %91, %92 : vector<8x128xi1>, vector<8x128xf32>
    %94 = arith.addf %79, %93 : vector<8x128xf32>
    %c3_i32_20 = arith.constant 3 : i32
    %95 = vector.broadcast %c3_i32_20 : i32 to vector<8x128xi32>
    %96 = arith.cmpi slt, %69, %95 : vector<8x128xi32>
    %cst_21 = arith.constant 5.000000e-01 : f32
    %97 = arith.mulf %87, %cst_21 : f32
    %cst_22 = arith.constant 0.000000e+00 : f32
    %98 = vector.broadcast %97 : f32 to vector<8x128xf32>
    %99 = vector.broadcast %cst_22 : f32 to vector<8x128xf32>
    %100 = arith.select %96, %98, %99 : vector<8x128xi1>, vector<8x128xf32>
    %101 = arith.addf %86, %100 : vector<8x128xf32>
    %c2 = arith.constant 2 : index
    %102 = memref.load %arg2[%c2] : memref<4xf32, #tpu.memory_space<smem>>
    %103 = arith.addf %88, %102 : f32
    %c3_i32_23 = arith.constant 3 : i32
    %104 = vector.broadcast %c3_i32_23 : i32 to vector<8x128xi32>
    %105 = arith.cmpi eq, %69, %104 : vector<8x128xi32>
    %cst_24 = arith.constant 0.000000e+00 : f32
    %106 = vector.broadcast %102 : f32 to vector<8x128xf32>
    %107 = vector.broadcast %cst_24 : f32 to vector<8x128xf32>
    %108 = arith.select %105, %106, %107 : vector<8x128xi1>, vector<8x128xf32>
    %109 = arith.addf %94, %108 : vector<8x128xf32>
    %c4_i32_25 = arith.constant 4 : i32
    %110 = vector.broadcast %c4_i32_25 : i32 to vector<8x128xi32>
    %111 = arith.cmpi slt, %69, %110 : vector<8x128xi32>
    %cst_26 = arith.constant 0.333333343 : f32
    %112 = arith.mulf %102, %cst_26 : f32
    %cst_27 = arith.constant 0.000000e+00 : f32
    %113 = vector.broadcast %112 : f32 to vector<8x128xf32>
    %114 = vector.broadcast %cst_27 : f32 to vector<8x128xf32>
    %115 = arith.select %111, %113, %114 : vector<8x128xi1>, vector<8x128xf32>
    %116 = arith.addf %101, %115 : vector<8x128xf32>
    %c3 = arith.constant 3 : index
    %117 = memref.load %arg2[%c3] : memref<4xf32, #tpu.memory_space<smem>>
    %118 = arith.addf %103, %117 : f32
    %c5_i32_28 = arith.constant 5 : i32
    %119 = vector.broadcast %c5_i32_28 : i32 to vector<8x128xi32>
    %120 = arith.cmpi eq, %69, %119 : vector<8x128xi32>
    %cst_29 = arith.constant 0.000000e+00 : f32
    %121 = vector.broadcast %117 : f32 to vector<8x128xf32>
    %122 = vector.broadcast %cst_29 : f32 to vector<8x128xf32>
    %123 = arith.select %120, %121, %122 : vector<8x128xi1>, vector<8x128xf32>
    %124 = arith.addf %109, %123 : vector<8x128xf32>
    %c6_i32_30 = arith.constant 6 : i32
    %125 = vector.broadcast %c6_i32_30 : i32 to vector<8x128xi32>
    %126 = arith.cmpi slt, %69, %125 : vector<8x128xi32>
    %cst_31 = arith.constant 2.000000e-01 : f32
    %127 = arith.mulf %117, %cst_31 : f32
    %cst_32 = arith.constant 0.000000e+00 : f32
    %128 = vector.broadcast %127 : f32 to vector<8x128xf32>
    %129 = vector.broadcast %cst_32 : f32 to vector<8x128xf32>
    %130 = arith.select %126, %128, %129 : vector<8x128xi1>, vector<8x128xf32>
    %131 = arith.addf %116, %130 : vector<8x128xf32>
    %132 = arith.mulf %0, %124 : vector<8x128xf32>
    %cst_33 = arith.constant dense<0.000000e+00> : vector<128xf32>
    %133 = vector.multi_reduction <add>, %132, %cst_33 [0] : vector<8x128xf32> to vector<128xf32>
    %134 = vector.shape_cast %133 : vector<128xf32> to vector<1x128xf32>
    %135 = arith.mulf %0, %131 : vector<8x128xf32>
    %cst_34 = arith.constant dense<0.000000e+00> : vector<128xf32>
    %136 = vector.multi_reduction <add>, %135, %cst_34 [0] : vector<8x128xf32> to vector<128xf32>
    %137 = vector.shape_cast %136 : vector<128xf32> to vector<1x128xf32>
    %138 = vector.broadcast %118 : f32 to vector<1x128xf32>
    %139 = arith.mulf %138, %4 : vector<1x128xf32>
    %140 = arith.subf %137, %139 : vector<1x128xf32>
    %cst_35 = arith.constant 9.99999974E-6 : f32
    %141 = vector.broadcast %cst_35 : f32 to vector<1x128xf32>
    %142 = arith.addf %140, %141 : vector<1x128xf32>
    %143 = tpu.reciprocal %142 : vector<1x128xf32> -> vector<1x128xf32>
    %c0_36 = arith.constant 0 : index
    %c0_37 = arith.constant 0 : index
    %144 = vector.load %arg3[%c0_36, %c0_37] : memref<1x128xf32, #tpu.memory_space<vmem>>, vector<1x128xf32>
    %145 = arith.mulf %144, %143 : vector<1x128xf32>
    %c0_38 = arith.constant 0 : index
    %c0_39 = arith.constant 0 : index
    %146 = vector.load %arg4[%c0_38, %c0_39] : memref<1x128xf32, #tpu.memory_space<vmem>>, vector<1x128xf32>
    %147 = arith.mulf %134, %145 : vector<1x128xf32>
    %148 = arith.subf %146, %147 : vector<1x128xf32>
    %149 = vector.broadcast %145 : vector<1x128xf32> to vector<8x128xf32>
    %150 = arith.mulf %0, %149 : vector<8x128xf32>
    %151 = vector.broadcast %148 : vector<1x128xf32> to vector<8x128xf32>
    %152 = arith.addf %150, %151 : vector<8x128xf32>
    %c0_40 = arith.constant 0 : index
    %c0_41 = arith.constant 0 : index
    %153 = vector.load %arg5[%c0_40, %c0_41] : memref<8x128xf32, #tpu.memory_space<vmem>>, vector<8x128xf32>
    tpu.vector_store %arg5[%c0_40, %c0_41], %152 {strides = array<i32>} : memref<8x128xf32, #tpu.memory_space<vmem>>, vector<8x128xf32>,
    %154 = tpu.iota {dimensions = array<i32: 0>} : vector<8x128xi32>
    %c0_i32_42 = arith.constant 0 : i32
    %155 = vector.broadcast %c0_i32_42 : i32 to vector<8x128xi32>
    %156 = arith.cmpi eq, %154, %155 : vector<8x128xi32>
    %c1_i32_43 = arith.constant 1 : i32
    %157 = vector.broadcast %c1_i32_43 : i32 to vector<8x128xi32>
    %158 = arith.cmpi eq, %154, %157 : vector<8x128xi32>
    %cst_44 = arith.constant 0.000000e+00 : f32
    %159 = vector.shape_cast %140 : vector<1x128xf32> to vector<1x128xf32>
    %160 = vector.broadcast %159 : vector<1x128xf32> to vector<8x128xf32>
    %161 = vector.broadcast %cst_44 : f32 to vector<8x128xf32>
    %162 = arith.select %158, %160, %161 : vector<8x128xi1>, vector<8x128xf32>
    %163 = vector.shape_cast %134 : vector<1x128xf32> to vector<1x128xf32>
    %164 = vector.broadcast %163 : vector<1x128xf32> to vector<8x128xf32>
    %165 = arith.select %156, %164, %162 : vector<8x128xi1>, vector<8x128xf32>
    %c0_45 = arith.constant 0 : index
    %c0_46 = arith.constant 0 : index
    %166 = vector.load %arg6[%c0_45, %c0_46] : memref<8x128xf32, #tpu.memory_space<vmem>>, vector<8x128xf32>
    tpu.vector_store %arg6[%c0_45, %c0_46], %165 {strides = array<i32>} : memref<8x128xf32, #tpu.memory_space<vmem>>, vector<8x128xf32>,
    return
  }
  func.func @transform_0(%arg0: i32) -> (i32, i32) {
    %c0_i32 = arith.constant 0 : i32
    %c0_i32_0 = arith.constant 0 : i32
    return %c0_i32, %arg0 : i32, i32
  }
  func.func @transform_1(%arg0: i32) -> i32 {
    %c0_i32 = arith.constant 0 : i32
    %c0_i32_0 = arith.constant 0 : i32
    return %c0_i32 : i32
  }
  func.func @transform_2(%arg0: i32) -> (i32, i32) {
    %c0_i32 = arith.constant 0 : i32
    %c0_i32_0 = arith.constant 0 : i32
    return %c0_i32, %arg0 : i32, i32
  }
  func.func @transform_3(%arg0: i32) -> (i32, i32) {
    %c0_i32 = arith.constant 0 : i32
    %c0_i32_0 = arith.constant 0 : i32
    return %c0_i32, %arg0 : i32, i32
  }
  func.func @transform_4(%arg0: i32) -> (i32, i32) {
    %c0_i32 = arith.constant 0 : i32
    %c0_i32_0 = arith.constant 0 : i32
    return %c0_i32, %arg0 : i32, i32
  }
  func.func @transform_5(%arg0: i32) -> (i32, i32) {
    %c0_i32 = arith.constant 0 : i32
    %c0_i32_0 = arith.constant 0 : i32
    return %c0_i32, %arg0 : i32, i32
  }
}

</mosaic_0001>

<bundles_post_ra>
// kernel: tpu_custom_call.1
= control target key start
LH: loop header
LB: loop body
LE: loop exit
PB: predicated region body
PF: predicated region fallthrough
CT: control target
= control target key end

     0   :  { %11 = vsyncpa [#allocation3], 0  ;;  %s475_s0 = inlined_call_operand.hbm [shape: f32[8,128], index: 0, kind: input, shape index: {}]   ;;  %s476_s1 = inlined_call_operand.vmem [shape: f32[4], index: 1, kind: input, shape index: {}]   ;;  %s477_s2 = inlined_call_operand.vmem [shape: f32[1,128], index: 2, kind: input, shape index: {}]   ;;  %s478_s3 = inlined_call_operand.vmem [shape: f32[1,128], index: 3, kind: input, shape index: {}]   ;;  %s479_s4 = inlined_call_operand.hbm [shape: f32[8,128], index: 4, kind: output, shape index: {0}]   ;;  %s480_s5 = inlined_call_operand.hbm [shape: f32[8,128], index: 5, kind: output, shape index: {1}]  }
   0x1   :  { %12 = vsyncpa [#allocation5], 0 }
   0x2   :  { %13 = vsyncpa [#allocation4], 0 }
   0x3   :  { %14 = vsyncpa [#allocation9], 0  ;;  %s31_s20 = sshll.u32 %s476_s1, 4  ;;  %s323_s21 = smov [#allocation2]   ;;  %s32_s20 = int_to_ptr.vmem [resolvable:$true] %s31_s20 }
   0x4   :  { %s21_s22 = sshll.u32 %s323_s21, 4  ;;  %s237_s25 = scalar_lea.hbm %s475_s0, 128  ;;  %s22_s22 = int_to_ptr.vmem [resolvable:$true] %s21_s22 }
   0x5   :  { %p238_p0 = scmp.ne.s32.totalorder %s475_s0, %s237_s25  ;;  %p241_p1 = scmp.lt.u32.totalorder %s237_s25, %s475_s0 }
   0x7   :  { %p243_p2 = pnand %p241_p1, %p238_p0 }
   0x9   :  { %246 = shalt.err (!%p243_p2)
}
   0xa   :  { %s247_s30 = scalar_lea.vmem %s22_s22, 128  ;;  %p252_p4 = scmp.lt.s32.totalorder %s22_s22, %s22_s22 }
   0xb   :  { %p248_p3 = scmp.ne.s32.totalorder %s22_s22, %s247_s30  ;;  %p253_p5 = scmp.lt.s32.totalorder %s247_s30, %s247_s30 }
   0xd   :  { %p254_p6 = por %p253_p5, %p252_p4 }
   0xf   :  { %p255_p7 = pnand %p254_p6, %p248_p3 }
  0x11   :  { %258 = shalt.err (!%p255_p7)
}
  0x12   :  { %24 = dma.hbm_to_vmem [thread:$0]  %s475_s0, 128, %s22_s22, [#allocation3]  }
  0x13   :  { %s259_s7 = scalar_lea.vmem %s32_s20, 16  ;;  %p264_p9 = scmp.lt.s32.totalorder %s32_s20, %s32_s20 }
  0x14   :  { %p260_p8 = scmp.ne.s32.totalorder %s32_s20, %s259_s7  ;;  %p265_p10 = scmp.lt.s32.totalorder %s259_s7, %s259_s7 }
  0x16   :  { %p266_p11 = por %p265_p10, %p264_p9 }
  0x18   :  { %p267_p12 = pnand %p266_p11, %p260_p8 }
  0x1a   :  { %270 = shalt.err (!%p267_p12)
}
  0x1b   :  { %s324_s8 = smov [#allocation6]  }
  0x1c   :  { %34 = dma.vmem_to_smem %s32_s20, 16, %s324_s8, [#allocation5]  }
  0x1d   :  { %315 = dma.done.wait [#allocation3], 128  }
  0x1e   :  { %316 = vsyncadd [#allocation3], 4294967168 }
  0x1f   :  { %317 = dma.done.wait [#allocation5], 16  }
  0x20   :  { %318 = vsyncadd [#allocation5], 4294967280 }
  0x21   :  { %45 = sfence }
  0x22   :  { %v373_v0 = vld [vmem:[#allocation2] sm:$0xff]  ;;  %v54_v1 = vlaneseq  ;;  %v325_v9 = vmov 0   ;;  %s399_s0 = sld [smem:[#allocation6 + $0x1]]  ;;  %s406_s9 = sld [smem:[#allocation6 + $0x2]] }
  0x23   :  { %v56_v2 = vrot.slane %v373_v0, 7  ;;  %v63_v3 = vrot.slane %v373_v0, 6  ;;  %v71_v5 = vrot.slane %v373_v0, 5  ;;  %v47_v6 = vrot.slane %v373_v0, 4  ;;  %s409_s10 = sld [smem:[#allocation6 + $0x3]]  ;;  %s422_s11 = sld [smem:[#allocation6]] }
  0x24   :  { %v377_v4 = vshrl.u32 %v54_v1, 7  ;;  %v87_v8 = vrot.slane %v373_v0, 3  ;;  %v95_v12 = vrot.slane %v373_v0, 2  ;;  %v103_v15 = vrot.slane %v373_v0, 1  ;;  %s326_s18 = smov [#allocation8]  }
  0x25   :  { %vm57_vm0 = vcmp.gt.f32.partialorder %v56_v2, %v373_v0  ;;  %vm58_vm1 = vcmp.eq.f32.partialorder %v56_v2, %v373_v0  ;;  %vm65_vm3 = vcmp.eq.f32.partialorder %v63_v3, %v373_v0  ;;  %vm387_vm6 = vcmp.gt.f32.partialorder %v63_v3, %v373_v0  ;;  %s213_s19 = sshll.u32 %s326_s18, 4  ;;  %s214_s19 = int_to_ptr.vmem [resolvable:$true] %s213_s19 }
  0x26   :  { %vm59_vm2 = vcmp.ge.s32.totalorder %v377_v4, 1  ;;  %vm66_vm4 = vcmp.ge.s32.totalorder %v377_v4, 2  ;;  %vm73_vm8 = vcmp.eq.f32.partialorder %v71_v5, %v373_v0  ;;  %vm74_vm9 = vcmp.ge.s32.totalorder %v377_v4, 3  ;;  %s271_s20 = scalar_lea.vmem %s214_s19, 128  ;;  %p276_p0 = scmp.lt.s32.totalorder %s214_s19, %s214_s19 }
  0x27   :  { %vm60_vm5 = vmand %vm58_vm1, %vm59_vm2  ;;  %vm395_vm11 = vcmp.gt.f32.partialorder %v71_v5, %v373_v0  ;;  %vm81_vm13 = vcmp.eq.f32.partialorder %v47_v6, %v373_v0  ;;  %vm82_vm14 = vcmp.ge.s32.totalorder %v377_v4, 4  ;;  %vm89_vm2 = vcmp.eq.f32.partialorder %v87_v8, %v373_v0  ;;  %p272_p13 = scmp.ne.s32.totalorder %s214_s19, %s271_s20  ;;  %p277_p1 = scmp.lt.s32.totalorder %s271_s20, %s271_s20 }
  0x28   :  { %vm61_vm7 = vmor %vm57_vm0, %vm60_vm5  ;;  %vm80_vm0 = vcmp.gt.f32.partialorder %v47_v6, %v373_v0  ;;  %v48_v16 = vadd.f32 %v47_v6, %v373_v0  ;;  %vm88_vm5 = vcmp.gt.f32.partialorder %v87_v8, %v373_v0  ;;  %s127_s12 = smul.f32 0.5, %s399_s0  ;;  %v123_v30 = vstv %s399_s0 }
  0x29   :  { %v62_v10 = vsel %vm61_vm7, 1, %v325_v9  ;;  %vm67_vm10 = vmand %vm65_vm3, %vm66_vm4  ;;  %vm90_vm3 = vcmp.ge.s32.totalorder %v377_v4, 5  ;;  %vm97_vm7 = vcmp.eq.f32.partialorder %v95_v12, %v373_v0  ;;  %s138_s13 = smul.f32 0.33333334, %s406_s9  ;;  %v114_v29 = vstv %s422_s11  ;;  %s121_s15 = sadd.f32 %s399_s0, %s422_s11 }
  0x2a   :  { %vm68_vm12 = vmor %vm387_vm6, %vm67_vm10  ;;  %vm96_vm10 = vcmp.gt.f32.partialorder %v95_v12, %v373_v0  ;;  %v49_v21 = vrot.slane %v48_v16, 2  ;;  %s149_s14 = smul.f32 0.2, %s409_s10  ;;  %v128_v31 = vstv %s127_s12  ;;  %v134_v32 = vstv %s406_s9  ;;  %p278_p2 = por %p277_p1, %p276_p0 }
  0x2b   :  { %v69_v13 = vsel %vm68_vm12, 1, %v325_v9  ;;  %vm75_vm15 = vmand %vm73_vm8, %vm74_vm9  ;;  %vm98_vm8 = vcmp.ge.s32.totalorder %v377_v4, 6  ;;  %vm105_vm12 = vcmp.eq.f32.partialorder %v103_v15, %v373_v0  ;;  %v139_v33 = vstv %s138_s13  ;;  %s132_s16 = sadd.f32 %s406_s9, %s121_s15 }
  0x2c   :  { %v70_v14 = vadd.s32 %v69_v13, %v62_v10  ;;  %vm76_vm1 = vmor %vm395_vm11, %vm75_vm15  ;;  %vm104_vm15 = vcmp.gt.f32.partialorder %v103_v15, %v373_v0  ;;  %v50_v26 = vadd.f32 %v49_v21, %v48_v16  ;;  %v145_v34 = vstv %s409_s10  ;;  %p279_p3 = pnand %p278_p2, %p272_p13 }
  0x2d   :  { %v77_v17 = vsel %vm76_vm1, 1, %v325_v9  ;;  %vm83_vm4 = vmand %vm81_vm13, %vm82_vm14  ;;  %vm106_vm13 = vcmp.ge.s32.totalorder %v377_v4, 7  ;;  %v150_v35 = vstv %s149_s14  ;;  %s143_s17 = sadd.f32 %s409_s10, %s132_s16 }
  0x2e   :  { %v78_v18 = vadd.s32 %v77_v17, %v70_v14  ;;  %vm84_vm6 = vmor %vm80_vm0, %vm83_vm4  ;;  %v51_v48 = vrot.slane %v50_v26, 1 }
  0x2f   :  { %v85_v19 = vsel %vm84_vm6, 1, %v325_v9  ;;  %vm91_vm9 = vmand %vm89_vm2, %vm90_vm3  ;;  %v167_v61 = vstv %s143_s17 }
  0x30   :  { %v86_v20 = vadd.s32 %v85_v19, %v78_v18  ;;  %vm92_vm11 = vmor %vm88_vm5, %vm91_vm9  ;;  %v52_v53 = vadd.f32 %v51_v48, %v50_v26 }
  0x31   :  { %v93_v22 = vsel %vm92_vm11, 1, %v325_v9  ;;  %vm99_vm14 = vmand %vm97_vm7, %vm98_vm8  ;;  %vm193_vm11 = vcmp.eq.s32.totalorder %v377_v4, 1 }
  0x32   :  { %v94_v23 = vadd.s32 %v93_v22, %v86_v20  ;;  %vm100_vm0 = vmor %vm96_vm10, %vm99_vm14  ;;  %v53_v58 = vmul.f32 0.125, %v52_v53 }
  0x33   :  { %v101_v24 = vsel %vm100_vm0, 1, %v325_v9  ;;  %vm107_vm1 = vmand %vm105_vm12, %vm106_vm13  ;;  %vm192_vm12 = vcmp.eq.s32.totalorder %v377_v4, 0 }
  0x34   :  { %v102_v25 = vadd.s32 %v101_v24, %v94_v23  ;;  %vm108_vm2 = vmor %vm104_vm15, %vm107_vm1  ;;  %v168_v2 = vmul.f32 %v167_v61, %v53_v58 }
  0x35   :  { %v109_v27 = vsel %vm108_vm2, 1, %v325_v9 }
  0x36   :  { %v110_v28 = vadd.s32 %v109_v27, %v102_v25 }
  0x38   :  { %vm113_vm3 = vcmp.eq.s32.totalorder %v110_v28, 1  ;;  %vm117_vm4 = vcmp.lt.s32.totalorder %v110_v28, 2  ;;  %vm122_vm5 = vcmp.eq.s32.totalorder %v110_v28, 2  ;;  %vm126_vm6 = vcmp.lt.s32.totalorder %v110_v28, 3 }
  0x39   :  { %v115_v36 = vsel %vm113_vm3, %v114_v29, 0.0  ;;  %v118_v37 = vsel %vm117_vm4, %v114_v29, 0.0  ;;  %v124_v38 = vsel %vm122_vm5, %v123_v30, 0.0  ;;  %v129_v39 = vsel %vm126_vm6, %v128_v31, 0.0 }
  0x3a   :  { %v125_v40 = vadd.f32 %v124_v38, %v115_v36  ;;  %v130_v41 = vadd.f32 %v129_v39, %v118_v37  ;;  %vm133_vm7 = vcmp.eq.s32.totalorder %v110_v28, 3  ;;  %vm137_vm8 = vcmp.lt.s32.totalorder %v110_v28, 4 }
  0x3b   :  { %v135_v42 = vsel %vm133_vm7, %v134_v32, 0.0  ;;  %v140_v43 = vsel %vm137_vm8, %v139_v33, 0.0  ;;  %vm144_vm9 = vcmp.eq.s32.totalorder %v110_v28, 5  ;;  %vm148_vm10 = vcmp.lt.s32.totalorder %v110_v28, 6 }
  0x3c   :  { %v136_v44 = vadd.f32 %v135_v42, %v125_v40  ;;  %v141_v45 = vadd.f32 %v140_v43, %v130_v41  ;;  %v146_v46 = vsel %vm144_vm9, %v145_v34, 0.0  ;;  %v151_v47 = vsel %vm148_vm10, %v150_v35, 0.0 }
  0x3e   :  { %v147_v49 = vadd.f32 %v146_v46, %v136_v44  ;;  %v152_v50 = vadd.f32 %v151_v47, %v141_v45 }
  0x40   :  { %v153_v51 = vmul.f32 %v147_v49, %v373_v0  ;;  %v160_v52 = vmul.f32 %v152_v50, %v373_v0 }
  0x42   :  { %v154_v54 = vrot.slane %v153_v51, 4  ;;  %v161_v55 = vrot.slane %v160_v52, 4 }
  0x44   :  { %v155_v56 = vadd.f32 %v154_v54, %v153_v51  ;;  %v162_v57 = vadd.f32 %v161_v55, %v160_v52 }
  0x46   :  { %v156_v59 = vrot.slane %v155_v56, 2  ;;  %v163_v60 = vrot.slane %v162_v57, 2 }
  0x48   :  { %v157_v62 = vadd.f32 %v156_v59, %v155_v56  ;;  %v164_v63 = vadd.f32 %v163_v60, %v162_v57 }
  0x4a   :  { %v165_v1 = vrot.slane %v164_v63, 1  ;;  %v158_v3 = vrot.slane %v157_v62, 1 }
  0x4c   :  { %v166_v5 = vadd.f32 %v165_v1, %v164_v63  ;;  %v159_v7 = vadd.f32 %v158_v3, %v157_v62 }
  0x4e   :  { %v169_v6 = vsub.f32 %v166_v5, %v168_v2 }
  0x50   :  { %v170_v8 = vadd.f32 1e-05, %v169_v6  ;;  %v194_v9 = vsel %vm193_vm11, %v169_v6, 0.0 }
  0x51   :  { %v195_v10 = vsel %vm192_vm12, %v159_v7, %v194_v9 }
  0x52   :  { %235 = vrcp.f32 %v170_v8  ;;  %196 = vst [vmem:[#allocation8] sm:$0xff] %v195_v10 }
  0x53   :  { %282 = shalt.err (!%p279_p3)
}
  0x54   :  { %s283_s23 = scalar_lea.hbm %s480_s5, 128 }
  0x55   :  { %p284_p4 = scmp.ne.s32.totalorder %s480_s5, %s283_s23  ;;  %p287_p5 = scmp.lt.u32.totalorder %s283_s23, %s480_s5 }
  0x57   :  { %p289_p6 = pnand %p287_p5, %p284_p4 }
  0x59   :  { %292 = shalt.err (!%p289_p6)
}
  0x5a   :  { %216 = dma.vmem_to_hbm [thread:$0]  %s214_s19, 128, %s480_s5, [#allocation9]   ;;  %v172_v11 = vld [vmem:[%s477_s2] sm:$0x1]  ;;  %v180_v12 = vsub.s32 0, %v377_v4 }
  0x5b   :  { %v174_v15 = vld [vmem:[%s478_s3] sm:$0x1]  ;;  %s327_s8 = smov [#allocation7]  }
  0x5c   :  { %v236_v13 = vpop.eup %235  ;;  %s203_s0 = sshll.u32 %s327_s8, 4  ;;  %s204_s0 = int_to_ptr.vmem [resolvable:$true] %s203_s0 }
  0x5d   :  { %v173_v14 = vmul.f32 %v236_v13, %v172_v11  ;;  %s293_s2 = scalar_lea.vmem %s204_s0, 128  ;;  %p298_p8 = scmp.lt.s32.totalorder %s204_s0, %s204_s0 }
  0x5e   :  { %p294_p7 = scmp.ne.s32.totalorder %s204_s0, %s293_s2  ;;  %p299_p9 = scmp.lt.s32.totalorder %s293_s2, %s293_s2 }
  0x5f   :  { %v175_v16 = vmul.f32 %v173_v14, %v159_v7  ;;  %v181_v17 = vrot.slane %v173_v14, %v180_v12 }
  0x60   :  { %p300_p10 = por %p299_p9, %p298_p8 }
  0x61   :  { %v176_v18 = vsub.f32 %v174_v15, %v175_v16  ;;  %v183_v19 = vmul.f32 %v181_v17, %v373_v0 }
  0x62   :  { %p301_p11 = pnand %p300_p10, %p294_p7 }
  0x63   :  { %v188_v20 = vrot.slane %v176_v18, %v180_v12 }
  0x65   :  { %v190_v21 = vadd.f32 %v188_v20, %v183_v19 }
  0x67   :  { %191 = vst [vmem:[#allocation7] sm:$0xff] %v190_v21 }
  0x68   :  { %304 = shalt.err (!%p301_p11)
}
  0x69   :  { %s305_s9 = scalar_lea.hbm %s479_s4, 128 }
  0x6a   :  { %p306_p12 = scmp.ne.s32.totalorder %s479_s4, %s305_s9  ;;  %p309_p13 = scmp.lt.u32.totalorder %s305_s9, %s479_s4 }
  0x6c   :  { %p311_p0 = pnand %p309_p13, %p306_p12 }
  0x6e   :  { %314 = shalt.err (!%p311_p0)
}
  0x6f   :  { %206 = dma.vmem_to_hbm [thread:$0]  %s204_s0, 128, %s479_s4, [#allocation4]  }
  0x70   :  { %319 = dma.done.wait [#allocation4], 128  }
  0x71   :  { %320 = vsyncadd [#allocation4], 4294967168 }
  0x72   :  { %321 = dma.done.wait [#allocation9], 128  }
  0x73   :  { %322 = vsyncadd [#allocation9], 4294967168 }
  0x74   :  { %223 = vsyncpa [#allocation3], 1 }
  0x75   :  { %224 = vsyncpa [#allocation4], 1 }
  0x76   :  { %225 = vsyncpa [#allocation9], 1 }
  0x77   :  { %226 = vsyncpa [#allocation5], 1 }

</bundles_post_ra>
